<compile_context>
chip_gen: v5e
topology: v5e:2x2
jax: 0.10.0
libtpu: 0.0.40
codegen_flags: <defaults>
</compile_context>

<pallas_src>
import jax
import jax.numpy as jnp
from jax.experimental import pallas as pl
from jax.experimental.pallas import tpu as pltpu


def attention_kernel(qt_ref, kt_ref, w_ref, b_ref, o_ref):
    # qt_ref, kt_ref: (H, TB)   activations, rows-on-lanes (one example per lane)
    # w_ref         : (H, 2)    folded score vectors (col 0: query, col 1: key), resident
    # b_ref         : (1, 1)    score bias (SMEM scalar)
    # o_ref         : (1, 1, TB) sigmoid scores, lane-dense
    q = qt_ref[...].astype(jnp.float32)
    k = kt_ref[...].astype(jnp.float32)
    w = w_ref[...].astype(jnp.float32)
    vq = w[:, 0:1]                      # (H, 1), broadcast across lanes
    vk = w[:, 1:2]
    # Fused VPU multiply-add, then a SINGLE reduction over the sublane (H) axis:
    # vreg-wise VPU adds + one cheap sublane reduce -> dense (1, TB).
    t = q * vq + k * vk
    s = jnp.sum(t, axis=0, keepdims=True) + b_ref[0, 0]
    # Exact sigmoid (EUP exp + divide) to stay within tight tolerance of the
    # PyTorch module; approx-reciprocal micro-opt intentionally not used.
    o_ref[...] = jax.nn.sigmoid(s)[None].astype(o_ref.dtype)


def fold_attention_params(wq, wk, ws, b):
    """One-time fold of the two projections into the score weights.

    wq, wk: (H, H) torch nn.Linear layout (out, in).  ws: (1, 2H).  b: (1,).
    Returns w2 of shape (H, 2) (column 0 = Ws_q @ Wq, column 1 = Ws_k @ Wk) and
    the bias as a (1, 1) scalar, such that
      score = query @ w2[:, 0] + key @ w2[:, 1] + b  ==  the original composition.
    Note: folding reorders f32 summation slightly vs. the unfused module.
    """
    H = wq.shape[0]
    vq = ws[:, :H] @ wq          # (1, H)
    vk = ws[:, H:] @ wk          # (1, H)
    w2 = jnp.concatenate([vq, vk], axis=0).T        # (H, 2)
    return w2, b.reshape(1, 1)


def _choose_tb(B, H, itemsize):
    """Batch-tile (lane) width.

    Targets ~2 MiB per activation tile (measured sweep: ~85%+ of HBM roofline),
    which keeps q+k double-buffered at <= ~16 MiB for practical H — inside the
    32 MiB scoped-VMEM limit requested below on v5e/v6e/v7x.  When the batch is
    big enough that splitting still leaves >= ~256 KiB tiles, cap at half the
    (128-aligned) batch so the grid has >= 2 parallel steps (both v7x TCs work).
    """
    tb = max(128, ((2 << 20) // (H * itemsize)) // 128 * 128)
    if B <= 256:
        return B                                   # toy batch: one exact block
    half_b = max(128, (B // 2) // 128 * 128)
    if half_b * H * itemsize >= (256 << 10):
        tb = min(tb, half_b)
    return tb if tb < B else B


def attention_forward(query, key, w2, b):
    """query/key: (B, H) activations (module layout).  w2: (H, 2) folded score
    weights.  b: (1, 1) score bias.  Returns (B, 1) sigmoid scores."""
    B, H = query.shape
    itemsize = jnp.dtype(query.dtype).itemsize
    TB = _choose_tb(B, H, itemsize)
    n = pl.cdiv(B, TB)

    # Layout plumbing: present activations rows-on-lanes ((H, B)) so the kernel
    # epilogue is lane-dense.  Ideally the producer emits (H, B) directly; this
    # transpose keeps the wrapper a drop-in for the (B, H) module interface.
    qt = query.T
    kt = key.T

    out = pl.pallas_call(
        attention_kernel,
        out_shape=jax.ShapeDtypeStruct((n, 1, TB), query.dtype),
        grid=(n,),
        in_specs=[
            pl.BlockSpec((H, TB), lambda i: (0, i)),            # query tile
            pl.BlockSpec((H, TB), lambda i: (0, i)),            # key tile
            pl.BlockSpec((H, 2), lambda i: (0, 0)),              # folded weights (resident)
            pl.BlockSpec((1, 1), lambda i: (0, 0),
                         memory_space=pltpu.MemorySpace.SMEM),   # bias scalar
        ],
        out_specs=pl.BlockSpec((1, 1, TB), lambda i: (i, 0, 0)),
        compiler_params=pltpu.CompilerParams(
            dimension_semantics=("parallel",),
            vmem_limit_bytes=32 * 1024 * 1024,
        ),
    )(qt, kt, w2, b)

    # Tail blocks are padded; clip to B and restore the module's (B, 1) shape.
    return out.reshape(-1)[:B].reshape(B, 1)


if __name__ == "__main__":
    B, H = 8, 32  # small shapes: batch=8, hidden=32

    root = jax.random.PRNGKey(0)
    ks = jax.random.split(root, 6)

    # Inputs (torch forward takes `query`, `key` of shape (B, hidden)).
    query = jax.random.normal(ks[0], (B, H), dtype=jnp.float32)
    key_in = jax.random.normal(ks[1], (B, H), dtype=jnp.float32)

    # Deterministic synthetic parameters (torch nn.Linear weight layout: (out, in)).
    wq = jax.random.normal(ks[2], (H, H), dtype=jnp.float32) * 0.1      # query_proj.weight
    wk = jax.random.normal(ks[3], (H, H), dtype=jnp.float32) * 0.1      # key_proj.weight
    ws = jax.random.normal(ks[4], (1, 2 * H), dtype=jnp.float32) * 0.1  # score_proj.weight
    b = jax.random.normal(ks[5], (1,), dtype=jnp.float32) * 0.1          # score_proj.bias

    # One-time weight preparation (outside the per-call path).
    w2, b2 = fold_attention_params(wq, wk, ws, b)
    w2, b2 = jax.block_until_ready((w2, b2))

    out = attention_forward(query, key_in, w2, b2)
    out = jax.block_until_ready(out)

    # Pure-JAX reference (mirrors the PyTorch forward exactly).
    ref = jax.nn.sigmoid(
        jnp.concatenate([query @ wq.T, key_in @ wk.T], axis=1) @ ws.T + b
    )
    assert out.shape == (B, 1), out.shape
    # Folding changes f32 summation order slightly; allow a small tolerance.
    assert jnp.allclose(out, ref, atol=1e-4, rtol=1e-4), "mismatch vs reference"

    print("KERNEL_OK")
</pallas_src>

<mosaic_0001>
module attributes {stable_mosaic.version = 11 : i64} {
  func.func @attention_kernel(%arg0: i32, %arg1: memref<32x8xf32, #tpu.memory_space<vmem>>, %arg2: memref<32x8xf32, #tpu.memory_space<vmem>>, %arg3: memref<32x2xf32, #tpu.memory_space<vmem>>, %arg4: memref<1x1xf32, #tpu.memory_space<smem>>, %arg5: memref<1x1x8xf32, #tpu.memory_space<vmem>>) attributes {dimension_semantics = [#tpu.dimension_semantics<parallel>], iteration_bounds = array<i64: 1>, scalar_prefetch = 0 : i64, scratch_operands = 0 : i64, tpu.core_type = #tpu.core_type<tc>, window_params = [{transform_indices = @transform_0, window_bounds = array<i64: 32, 8>}, {transform_indices = @transform_1, window_bounds = array<i64: 32, 8>}, {pipeline_mode = #tpu.pipeline_mode<synchronous>, transform_indices = @transform_2, window_bounds = array<i64: 32, 2>}, {transform_indices = @transform_3, window_bounds = array<i64: 1, 1>}, {transform_indices = @transform_4, window_bounds = array<i64: 1, 1, 8>}]} {
    %c0 = arith.constant 0 : index
    %c0_0 = arith.constant 0 : index
    %0 = vector.load %arg1[%c0, %c0_0] : memref<32x8xf32, #tpu.memory_space<vmem>>, vector<32x8xf32>
    %c0_1 = arith.constant 0 : index
    %c0_2 = arith.constant 0 : index
    %1 = vector.load %arg2[%c0_1, %c0_2] : memref<32x8xf32, #tpu.memory_space<vmem>>, vector<32x8xf32>
    %c0_3 = arith.constant 0 : index
    %c0_4 = arith.constant 0 : index
    %2 = vector.load %arg3[%c0_3, %c0_4] : memref<32x2xf32, #tpu.memory_space<vmem>>, vector<32x2xf32>
    %3 = vector.extract_strided_slice %2 {offsets = [0, 0], sizes = [32, 1], strides = [1, 1]} : vector<32x2xf32> to vector<32x1xf32>
    %4 = vector.extract_strided_slice %2 {offsets = [0, 1], sizes = [32, 1], strides = [1, 1]} : vector<32x2xf32> to vector<32x1xf32>
    %5 = vector.broadcast %3 : vector<32x1xf32> to vector<32x8xf32>
    %6 = arith.mulf %0, %5 : vector<32x8xf32>
    %7 = vector.broadcast %4 : vector<32x1xf32> to vector<32x8xf32>
    %8 = arith.mulf %1, %7 : vector<32x8xf32>
    %9 = arith.addf %6, %8 : vector<32x8xf32>
    %cst = arith.constant dense<0.000000e+00> : vector<8xf32>
    %10 = vector.multi_reduction <add>, %9, %cst [0] : vector<32x8xf32> to vector<8xf32>
    %11 = vector.shape_cast %10 : vector<8xf32> to vector<1x8xf32>
    %c0_5 = arith.constant 0 : index
    %c0_6 = arith.constant 0 : index
    %12 = memref.load %arg4[%c0_5, %c0_6] : memref<1x1xf32, #tpu.memory_space<smem>>
    %13 = vector.broadcast %12 : f32 to vector<1x8xf32>
    %14 = arith.addf %11, %13 : vector<1x8xf32>
    %15 = arith.negf %14 : vector<1x8xf32>
    %16 = math.exp %15 : vector<1x8xf32>
    %cst_7 = arith.constant 1.000000e+00 : f32
    %17 = vector.broadcast %cst_7 : f32 to vector<1x8xf32>
    %18 = arith.addf %17, %16 : vector<1x8xf32>
    %19 = arith.divf %17, %18 : vector<1x8xf32>
    %20 = vector.shape_cast %19 : vector<1x8xf32> to vector<1x1x8xf32>
    %c0_8 = arith.constant 0 : index
    %c0_9 = arith.constant 0 : index
    %c0_10 = arith.constant 0 : index
    %21 = vector.load %arg5[%c0_8, %c0_9, %c0_10] : memref<1x1x8xf32, #tpu.memory_space<vmem>>, vector<1x1x8xf32>
    tpu.vector_store %arg5[%c0_8, %c0_9, %c0_10], %20 {strides = array<i32>} : memref<1x1x8xf32, #tpu.memory_space<vmem>>, vector<1x1x8xf32>,
    return
  }
  func.func @transform_0(%arg0: i32) -> (i32, i32) {
    %c0_i32 = arith.constant 0 : i32
    %c0_i32_0 = arith.constant 0 : i32
    return %c0_i32, %arg0 : i32, i32
  }
  func.func @transform_1(%arg0: i32) -> (i32, i32) {
    %c0_i32 = arith.constant 0 : i32
    %c0_i32_0 = arith.constant 0 : i32
    return %c0_i32, %arg0 : i32, i32
  }
  func.func @transform_2(%arg0: i32) -> (i32, i32) {
    %c0_i32 = arith.constant 0 : i32
    %c0_i32_0 = arith.constant 0 : i32
    %c0_i32_1 = arith.constant 0 : i32
    return %c0_i32, %c0_i32_0 : i32, i32
  }
  func.func @transform_3(%arg0: i32) -> (i32, i32) {
    %c0_i32 = arith.constant 0 : i32
    %c0_i32_0 = arith.constant 0 : i32
    %c0_i32_1 = arith.constant 0 : i32
    return %c0_i32, %c0_i32_0 : i32, i32
  }
  func.func @transform_4(%arg0: i32) -> (i32, i32, i32) {
    %c0_i32 = arith.constant 0 : i32
    %c0_i32_0 = arith.constant 0 : i32
    %c0_i32_1 = arith.constant 0 : i32
    return %arg0, %c0_i32, %c0_i32_0 : i32, i32, i32
  }
}

</mosaic_0001>

<bundles_post_ra>
// kernel: tpu_custom_call.1
= control target key start
LH: loop header
LB: loop body
LE: loop exit
PB: predicated region body
PF: predicated region fallthrough
CT: control target
= control target key end

     0   :  { %v172_v1 = vmov 1   ;;  %v173_v2 = vmov 0   ;;  %s242_s0 = inlined_call_operand.vmem [shape: f32[32,8], index: 0, kind: input, shape index: {}]   ;;  %s243_s1 = inlined_call_operand.vmem [shape: f32[32,8], index: 1, kind: input, shape index: {}]   ;;  %s244_s2 = inlined_call_operand.vmem [shape: f32[32,2], index: 2, kind: input, shape index: {}]   ;;  %s245_s3 = inlined_call_operand.<no memory space> [shape: f32[1,1], index: 3, kind: input, shape index: {}]   ;;  %s246_s4 = inlined_call_operand.hbm [shape: f32[1,1,8], index: 4, kind: output, shape index: {}]  }
   0x1   :  { %v27_v0 = vld [vmem:[%s244_s2] sm:$0xff]  ;;  %138 = vset.pattern.permute.xlu1 %v172_v1  ;;  %137 = vset.pattern.permute.xlu0 %v173_v2  ;;  %v29_v3 = vld [vmem:[%s244_s2 + $0x10] sm:$0xff] }
   0x2   :  { %10 = vsyncpa [#allocation4], 0  ;;  %56 = vperm.xlu1 %138, %v27_v0   ;;  %33 = vperm.xlu0 %137, %v27_v0   ;;  %v28_v4 = vld [vmem:[%s244_s2 + $0x8] sm:$0xff]  ;;  %v30_v5 = vld [vmem:[%s244_s2 + $0x18] sm:$0xff]  ;;  %vm79_vm0 = vcmask 64512   ;;  %v94_v46 = vstv %s245_s3  ;;  %s124_s3 = sshll.u32 %s246_s4, 4  ;;  %s125_s3 = int_to_ptr.hbm [resolvable:$true] %s124_s3 }
   0x3   :  { %139 = vset.pattern.permute.xlu2 %v173_v2  ;;  %v23_v9 = vld [vmem:[%s243_s1] sm:$0xff]  ;;  %v24_v11 = vld [vmem:[%s243_s1 + $0x8] sm:$0xff]  ;;  %v21_v16 = vld [vmem:[%s242_s0 + $0x10] sm:$0xff]  ;;  %vm115_vm4 = vcmask 57344  }
   0x4   :  { %43 = vperm.xlu2 %139, %v29_v3   ;;  %v19_v10 = vld [vmem:[%s242_s0] sm:$0xff]  ;;  %v20_v12 = vld [vmem:[%s242_s0 + $0x8] sm:$0xff]  ;;  %v25_v17 = vld [vmem:[%s243_s1 + $0x10] sm:$0xff] }
   0x5   :  { %v26_v27 = vld [vmem:[%s243_s1 + $0x18] sm:$0xff] }
   0x6   :  { %v22_v28 = vld [vmem:[%s242_s0 + $0x18] sm:$0xff]  ;;  %s174_s0 = smov [#allocation3]  }
   0x7   :  { %s122_s13 = sshll.u32 %s174_s0, 4  ;;  %s123_s13 = int_to_ptr.vmem [resolvable:$true] %s122_s13 }
   0xa   :  { %60 = vperm.xlu1 %138, %v28_v4   ;;  %38 = vperm.xlu0 %137, %v28_v4  }
   0xc   :  { %140 = vset.pattern.permute.xlu2 %v172_v1 }
   0xd   :  { %64 = vperm.xlu2 %140, %v29_v3  }
  0x12   :  { %68 = vperm.xlu1 %138, %v30_v5   ;;  %48 = vperm.xlu0 %137, %v30_v5  }
  0x1a   :  { %141 = vset.pattern.permute.xlu0 %v172_v1 }
  0x5e   :  { %v44_v6 = vpop.permute.xlu2 %43 }
  0x5f   :  { %v53_v22 = vmul.f32 %v44_v6, %v21_v16 }
  0x67   :  { %v65_v15 = vpop.permute.xlu2 %64 }
  0x68   :  { %v73_v24 = vmul.f32 %v65_v15, %v25_v17 }
  0x6a   :  { %v77_v30 = vadd.f32 %v73_v24, %v53_v22 }
  0x6c   :  { %v83_v36 = vsel %vm79_vm0, %v77_v30, 0.0 }
  0x74   :  { %v57_v7 = vpop.permute.xlu1 %56  ;;  %v34_v8 = vpop.permute.xlu0 %33 }
  0x75   :  { %v71_v13 = vmul.f32 %v57_v7, %v23_v9  ;;  %v51_v14 = vmul.f32 %v34_v8, %v19_v10 }
  0x77   :  { %v75_v23 = vadd.f32 %v71_v13, %v51_v14 }
  0x79   :  { %v80_v29 = vsel %vm79_vm0, %v75_v23, 0.0 }
  0x7c   :  { %v61_v18 = vpop.permute.xlu1 %60  ;;  %v39_v19 = vpop.permute.xlu0 %38 }
  0x7d   :  { %v72_v20 = vmul.f32 %v61_v18, %v24_v11  ;;  %v52_v21 = vmul.f32 %v39_v19, %v20_v12 }
  0x7f   :  { %v76_v25 = vadd.f32 %v72_v20, %v52_v21 }
  0x81   :  { %v81_v26 = vsel %vm79_vm0, %v76_v25, 0.0 }
  0x82   :  { %v82_v31 = vadd.f32 %v81_v26, %v80_v29 }
  0x84   :  { %v69_v32 = vpop.permute.xlu1 %68  ;;  %v49_v33 = vpop.permute.xlu0 %48  ;;  %v84_v38 = vadd.f32 %v83_v36, %v82_v31 }
  0x85   :  { %v74_v34 = vmul.f32 %v69_v32, %v26_v27  ;;  %v54_v35 = vmul.f32 %v49_v33, %v22_v28 }
  0x87   :  { %v78_v37 = vadd.f32 %v74_v34, %v54_v35 }
  0x89   :  { %v85_v39 = vsel %vm79_vm0, %v78_v37, 0.0 }
  0x8a   :  { %v86_v40 = vadd.f32 %v85_v39, %v84_v38 }
  0x8c   :  { %v87_v41 = vrot.slane %v86_v40, 4 }
  0x8e   :  { %v88_v42 = vadd.f32 %v87_v41, %v86_v40 }
  0x90   :  { %v89_v43 = vrot.slane %v88_v42, 2 }
  0x92   :  { %v90_v44 = vadd.f32 %v89_v43, %v88_v42 }
  0x94   :  { %v91_v45 = vrot.slane %v90_v44, 1 }
  0x96   :  { %v92_v47 = vadd.f32 %v91_v45, %v90_v44 }
  0x98   :  { %v95_v48 = vadd.f32 %v94_v46, %v92_v47 }
  0x9a   :  { %v133_v49 = vmul.f32 -1.442695, %v95_v48 }
  0x9c   :  { %142 = vpow2.f32 %v133_v49 }
  0xa2   :  { %v143_v50 = vpop.eup %142 }
  0xa3   :  { %v99_v51 = vadd.f32 1.0, %v143_v50 }
  0xa5   :  { %144 = vrcp.f32 %v99_v51  ;;  %v111_v55 = vand.u32 2147483648, %v99_v51  ;;  %v109_v57 = vand.u32 2147483647, %v99_v51  ;;  %vm105_vm2 = vweird.f32 %v99_v51 }
  0xa7   :  { %v112_v59 = vor.u32 1.1754944e-38, %v111_v55  ;;  %vm110_vm5 = vcmp.eq.f32.partialorder %v109_v57, 8.507059e+37 }
  0xab   :  { %v145_v52 = vpop.eup %144 }
  0xac   :  { %v101_v53 = vmul.f32 %v145_v52, %v99_v51  ;;  %vm106_vm1 = vweird.f32 %v145_v52 }
  0xad   :  { %vm107_vm3 = vmor %vm105_vm2, %vm106_vm1 }
  0xae   :  { %v102_v54 = vsub.f32 1.0, %v101_v53 }
  0xb0   :  { %v103_v56 = vmul.f32 %v145_v52, %v102_v54 }
  0xb2   :  { %v104_v58 = vadd.f32 %v145_v52, %v103_v56 }
  0xb4   :  { %v108_v60 = vsel %vm107_vm3, %v145_v52, %v104_v58 }
  0xb5   :  { %v113_v61 = vsel %vm110_vm5, %v112_v59, %v108_v60 }
  0xb6   :  { %116 = vst.msk [vmem:[#allocation3] sm:$0x1] %vm115_vm4, %v113_v61 }
  0xb7   :  { %127 = dma.vmem_to_hbm [thread:$0]  %s123_s13, 16, %s125_s3, [#allocation4]  }
  0xb8   :  { %170 = dma.done.wait [#allocation4], 16  }
  0xb9   :  { %171 = vsyncadd [#allocation4], 4294967280 }
  0xba   :  { %132 = vsyncpa [#allocation4], 1 }

</bundles_post_ra>
